<compile_context>
chip_gen: v7x
topology: tpu7x:2x2x1
jax: 0.10.0
libtpu: 0.0.40
codegen_flags: <defaults>
</compile_context>

<pallas_src>
import jax
import jax.numpy as jnp
from jax.experimental import pallas as pl
from jax.experimental.pallas import tpu as pltpu


def _round_up(x, m):
    return ((x + m - 1) // m) * m


def _tensorcores_per_chip():
    """2 on v7x (needs >=2 grid steps to engage both cores), else 1."""
    try:
        kind = jax.devices()[0].device_kind.lower()
    except Exception:
        return 1
    return 2 if "v7" in kind else 1


# ---------------------------------------------------------------------------
# Kernels
# ---------------------------------------------------------------------------

def _pose_decoder_prev_kernel(music_ref, prev_ref, w1a_ref, w1bf_ref,
                              b1_ref, w2_ref, b2_ref, o_ref):
    """Fused: in-kernel f32->bf16 cast + one-hot gather folded into W1_bot
    + split-K concat-matmul + bias + ReLU + second linear."""
    bm = music_ref.shape[0]
    out_size = w1bf_ref.shape[0]

    # Cast the f32 activation tile to bf16 in-register (no wrapper HBM pass).
    music = music_ref[...].astype(w1a_ref.dtype)                 # (bm, hid) bf16

    # one_hot(prev) @ (emb @ W1_bot): exact selection of a row of the folded
    # matrix; out-of-range ids give an all-zero row (torch would raise).
    idx = prev_ref[...]                                          # (bm, 1) int32
    cols = jax.lax.broadcasted_iota(jnp.int32, (bm, out_size), 1)
    one_hot = (cols == idx).astype(w1bf_ref.dtype)               # (bm, out) bf16

    # Layer 1: cat([music, prev_emb]) @ W1 == music @ W1_top + one_hot @ W1bf
    h = (jnp.dot(music, w1a_ref[...], preferred_element_type=jnp.float32)
         + jnp.dot(one_hot, w1bf_ref[...], preferred_element_type=jnp.float32)
         + b1_ref[...])
    h = jnp.maximum(h, 0.0).astype(w2_ref.dtype)                 # ReLU -> bf16

    # Layer 2
    o = jnp.dot(h, w2_ref[...], preferred_element_type=jnp.float32) + b2_ref[...]
    o_ref[...] = o.astype(o_ref.dtype)


def _pose_decoder_noprev_kernel(music_ref, w1a_ref, b1_ref, w2_ref, b2_ref,
                                o_ref):
    """prev is None: prev_emb == 0, only the music half of W1 contributes."""
    music = music_ref[...].astype(w1a_ref.dtype)
    h = (jnp.dot(music, w1a_ref[...], preferred_element_type=jnp.float32)
         + b1_ref[...])
    h = jnp.maximum(h, 0.0).astype(w2_ref.dtype)
    o = jnp.dot(h, w2_ref[...], preferred_element_type=jnp.float32) + b2_ref[...]
    o_ref[...] = o.astype(o_ref.dtype)


# ---------------------------------------------------------------------------
# pallas_call wrappers
# ---------------------------------------------------------------------------

def _mlp_call_prev(music, prev_i, w1a, w1bf, b1, w2, b2, *, block_b, out_dtype):
    B, hid = music.shape
    out_size = w2.shape[1]
    grid = (pl.cdiv(B, block_b),)
    in_bytes = jnp.dtype(music.dtype).itemsize
    flops = 2 * B * (hid * hid + out_size * hid + hid * out_size)
    bytes_accessed = (music.size * in_bytes + prev_i.size * 4
                      + w1a.size * 2 + w1bf.size * 2 + w2.size * 2
                      + b1.size * 4 + b2.size * 4
                      + B * out_size * jnp.dtype(out_dtype).itemsize)
    return pl.pallas_call(
        _pose_decoder_prev_kernel,
        out_shape=jax.ShapeDtypeStruct((B, out_size), out_dtype),
        grid_spec=pltpu.PrefetchScalarGridSpec(
            num_scalar_prefetch=0,
            grid=grid,
            in_specs=[
                pl.BlockSpec((block_b, hid), lambda i: (i, 0)),    # music tile (f32)
                pl.BlockSpec((block_b, 1), lambda i: (i, 0)),      # prev ids
                pl.BlockSpec((hid, hid), lambda i: (0, 0)),        # W1 music half
                pl.BlockSpec((out_size, hid), lambda i: (0, 0)),   # emb @ W1_bot (fused)
                pl.BlockSpec((1, hid), lambda i: (0, 0)),          # b1 (f32)
                pl.BlockSpec((hid, out_size), lambda i: (0, 0)),   # W2
                pl.BlockSpec((1, out_size), lambda i: (0, 0)),     # b2 (f32)
            ],
            out_specs=pl.BlockSpec((block_b, out_size), lambda i: (i, 0)),
        ),
        compiler_params=pltpu.CompilerParams(
            dimension_semantics=("parallel",)),
        cost_estimate=pl.CostEstimate(flops=int(flops), transcendentals=0,
                                      bytes_accessed=int(bytes_accessed)),
    )(music, prev_i, w1a, w1bf, b1, w2, b2)


def _mlp_call_noprev(music, w1a, b1, w2, b2, *, block_b, out_dtype):
    B, hid = music.shape
    out_size = w2.shape[1]
    grid = (pl.cdiv(B, block_b),)
    in_bytes = jnp.dtype(music.dtype).itemsize
    flops = 2 * B * (hid * hid + hid * out_size)
    bytes_accessed = (music.size * in_bytes + w1a.size * 2 + w2.size * 2
                      + b1.size * 4 + b2.size * 4
                      + B * out_size * jnp.dtype(out_dtype).itemsize)
    return pl.pallas_call(
        _pose_decoder_noprev_kernel,
        out_shape=jax.ShapeDtypeStruct((B, out_size), out_dtype),
        grid_spec=pltpu.PrefetchScalarGridSpec(
            num_scalar_prefetch=0,
            grid=grid,
            in_specs=[
                pl.BlockSpec((block_b, hid), lambda i: (i, 0)),    # music tile (f32)
                pl.BlockSpec((hid, hid), lambda i: (0, 0)),        # W1 music half
                pl.BlockSpec((1, hid), lambda i: (0, 0)),          # b1 (f32)
                pl.BlockSpec((hid, out_size), lambda i: (0, 0)),   # W2
                pl.BlockSpec((1, out_size), lambda i: (0, 0)),     # b2 (f32)
            ],
            out_specs=pl.BlockSpec((block_b, out_size), lambda i: (i, 0)),
        ),
        compiler_params=pltpu.CompilerParams(
            dimension_semantics=("parallel",)),
        cost_estimate=pl.CostEstimate(flops=int(flops), transcendentals=0,
                                      bytes_accessed=int(bytes_accessed)),
    )(music, w1a, b1, w2, b2)


# ---------------------------------------------------------------------------
# Module wrapper
# ---------------------------------------------------------------------------

class PoseDecoderPallas:
    """JAX/Pallas re-implementation of PoseDecoder (inference forward)."""

    def __init__(self, hid_size=256, out_size=128, key=jax.random.PRNGKey(0),
                 dtype=jnp.float32):
        self.hid_size = hid_size
        self.out_size = out_size
        k_emb, k_w1, k_b1, k_w2, k_b2 = jax.random.split(key, 5)

        # f32 master parameters (used by the pure-JAX reference).
        self.emb_table = jax.random.normal(k_emb, (out_size, hid_size), dtype)
        lim1 = 1.0 / jnp.sqrt(2.0 * hid_size)
        self.w1 = jax.random.uniform(k_w1, (2 * hid_size, hid_size), dtype,
                                     -lim1, lim1)
        self.b1 = jax.random.uniform(k_b1, (1, hid_size), dtype, -lim1, lim1)
        lim2 = 1.0 / jnp.sqrt(1.0 * hid_size)
        self.w2 = jax.random.uniform(k_w2, (hid_size, out_size), dtype,
                                     -lim2, lim2)
        self.b2 = jax.random.uniform(k_b2, (1, out_size), dtype, -lim2, lim2)

        # bf16 copies used by the kernel (MXU fast path; f32 accumulation).
        self.w1_top = self.w1[:hid_size].astype(jnp.bfloat16)       # music half
        # Fold the embedding table into the prev half of W1 (f32 precompute,
        # single bf16 cast):  prev_emb @ W1_bot == one_hot @ (emb @ W1_bot).
        self.w1b_fused = (self.emb_table @ self.w1[hid_size:]).astype(jnp.bfloat16)
        self.w2_bf = self.w2.astype(jnp.bfloat16)

    def _pick_block_b(self, B):
        if _tensorcores_per_chip() >= 2 and B >= 256:
            # v7x: ensure >=2 grid steps so both TensorCores get work.
            return min(1024, _round_up(-(-B // 2), 8))
        # Single-TC v5e/v6e: one big tile amortizes the ~0.35 us/step overhead.
        return min(2048, _round_up(B, 8))

    def __call__(self, music_emb, prev=None, *, block_b=None):
        B = music_emb.shape[0]
        out_dtype = music_emb.dtype
        if block_b is None:
            block_b = self._pick_block_b(B)
        block_b = max(8, _round_up(block_b, 8))

        # No wrapper-side cast / pad / slice: the kernel casts the f32 tile to
        # bf16 after load, and partial last blocks are masked by Pallas.
        if prev is None:
            return _mlp_call_noprev(music_emb, self.w1_top, self.b1,
                                    self.w2_bf, self.b2,
                                    block_b=block_b, out_dtype=out_dtype)
        prev_i = jnp.asarray(prev, jnp.int32).reshape(B, 1)
        return _mlp_call_prev(music_emb, prev_i, self.w1_top, self.w1b_fused,
                              self.b1, self.w2_bf, self.b2,
                              block_b=block_b, out_dtype=out_dtype)


def _reference(model, music_emb, prev=None):
    B = music_emb.shape[0]
    if prev is None:
        prev_emb = jnp.zeros((B, model.hid_size), dtype=music_emb.dtype)
    else:
        prev_emb = jnp.take(model.emb_table, prev, axis=0).astype(music_emb.dtype)
    x = jnp.concatenate([music_emb, prev_emb], axis=1)
    h = jnp.maximum(x @ model.w1 + model.b1, 0.0)
    return h @ model.w2 + model.b2


if __name__ == "__main__":
    key = jax.random.PRNGKey(0)
    k_model, k_music, k_prev = jax.random.split(key, 3)

    # Module defaults: hid_size=256, out_size=128; small batch.
    batch, hid_size, out_size = 8, 256, 128
    model = PoseDecoderPallas(hid_size=hid_size, out_size=out_size, key=k_model)

    music_emb = jax.random.normal(k_music, (batch, hid_size), jnp.float32)
    prev = jax.random.randint(k_prev, (batch,), 0, out_size, dtype=jnp.int32)

    # Case 1: prev is None (prev half of the reduction is skipped entirely).
    out_none = jax.block_until_ready(model(music_emb, prev=None))
    # Case 2: prev indices given (folded embedding gather inside the kernel).
    out_prev = jax.block_until_ready(model(music_emb, prev=prev))

    ref_none = _reference(model, music_emb, prev=None)
    ref_prev = _reference(model, music_emb, prev=prev)

    assert out_none.shape == (batch, out_size)
    assert out_prev.shape == (batch, out_size)
    # bf16 operands / f32 accumulation vs pure-f32 reference -> loose tolerance.
    assert jnp.allclose(out_none, ref_none, atol=5e-2, rtol=5e-2), \
        float(jnp.max(jnp.abs(out_none - ref_none)))
    assert jnp.allclose(out_prev, ref_prev, atol=5e-2, rtol=5e-2), \
        float(jnp.max(jnp.abs(out_prev - ref_prev)))

    # Partial final block (B not a multiple of 8): masked edge block, no pad/slice.
    out_odd = jax.block_until_ready(model(music_emb[:5], prev=prev[:5]))
    ref_odd = _reference(model, music_emb[:5], prev=prev[:5])
    assert out_odd.shape == (5, out_size)
    assert jnp.allclose(out_odd, ref_odd, atol=5e-2, rtol=5e-2)

    # Multi-step grid + partial final block (forced small tile).
    k_m2, k_p2 = jax.random.split(k_music)
    music2 = jax.random.normal(k_m2, (20, hid_size), jnp.float32)
    prev2 = jax.random.randint(k_p2, (20,), 0, out_size, dtype=jnp.int32)
    out_multi = jax.block_until_ready(model(music2, prev=prev2, block_b=8))
    ref_multi = _reference(model, music2, prev=prev2)
    assert out_multi.shape == (20, out_size)
    assert jnp.allclose(out_multi, ref_multi, atol=5e-2, rtol=5e-2)

    print("KERNEL_OK")
</pallas_src>

<mosaic_0001>
module attributes {stable_mosaic.version = 11 : i64} {
  func.func @_pose_decoder_noprev_kernel(%arg0: i32, %arg1: memref<8x256xf32, #tpu.memory_space<vmem>>, %arg2: memref<256x256xbf16, #tpu.memory_space<vmem>>, %arg3: memref<1x256xf32, #tpu.memory_space<vmem>>, %arg4: memref<256x128xbf16, #tpu.memory_space<vmem>>, %arg5: memref<1x128xf32, #tpu.memory_space<vmem>>, %arg6: memref<8x128xf32, #tpu.memory_space<vmem>>) attributes {dimension_semantics = [#tpu.dimension_semantics<parallel>], iteration_bounds = array<i64: 1>, scalar_prefetch = 0 : i64, scratch_operands = 0 : i64, tpu.core_type = #tpu.core_type<tc>, window_params = [{transform_indices = @transform_0, window_bounds = array<i64: 8, 256>}, {pipeline_mode = #tpu.pipeline_mode<synchronous>, transform_indices = @transform_1, window_bounds = array<i64: 256, 256>}, {pipeline_mode = #tpu.pipeline_mode<synchronous>, transform_indices = @transform_2, window_bounds = array<i64: 1, 256>}, {pipeline_mode = #tpu.pipeline_mode<synchronous>, transform_indices = @transform_3, window_bounds = array<i64: 256, 128>}, {pipeline_mode = #tpu.pipeline_mode<synchronous>, transform_indices = @transform_4, window_bounds = array<i64: 1, 128>}, {transform_indices = @transform_5, window_bounds = array<i64: 8, 128>}]} {
    %c0 = arith.constant 0 : index
    %c0_0 = arith.constant 0 : index
    %0 = vector.load %arg1[%c0, %c0_0] : memref<8x256xf32, #tpu.memory_space<vmem>>, vector<8x256xf32>
    %1 = arith.truncf %0 : vector<8x256xf32> to vector<8x256xbf16>
    %c0_1 = arith.constant 0 : index
    %c0_2 = arith.constant 0 : index
    %2 = vector.load %arg2[%c0_1, %c0_2] : memref<256x256xbf16, #tpu.memory_space<vmem>>, vector<256x256xbf16>
    %cst = arith.constant dense<0.000000e+00> : vector<8x256xf32>
    %3 = tpu.matmul %1, %2, %cst {dimension_numbers = #tpu.dot_dimension_numbers<[1], [0], [0], [1], [0, 0, 1, 1], [], []>} : vector<8x256xbf16>, vector<256x256xbf16>, vector<8x256xf32> -> vector<8x256xf32>
    %c0_3 = arith.constant 0 : index
    %c0_4 = arith.constant 0 : index
    %4 = vector.load %arg3[%c0_3, %c0_4] : memref<1x256xf32, #tpu.memory_space<vmem>>, vector<1x256xf32>
    %5 = vector.broadcast %4 : vector<1x256xf32> to vector<8x256xf32>
    %6 = arith.addf %3, %5 : vector<8x256xf32>
    %cst_5 = arith.constant 0.000000e+00 : f32
    %7 = vector.broadcast %cst_5 : f32 to vector<8x256xf32>
    %8 = arith.maximumf %6, %7 : vector<8x256xf32>
    %9 = arith.truncf %8 : vector<8x256xf32> to vector<8x256xbf16>
    %c0_6 = arith.constant 0 : index
    %c0_7 = arith.constant 0 : index
    %10 = vector.load %arg4[%c0_6, %c0_7] : memref<256x128xbf16, #tpu.memory_space<vmem>>, vector<256x128xbf16>
    %cst_8 = arith.constant dense<0.000000e+00> : vector<8x128xf32>
    %11 = tpu.matmul %9, %10, %cst_8 {dimension_numbers = #tpu.dot_dimension_numbers<[1], [0], [0], [1], [0, 0, 1, 1], [], []>} : vector<8x256xbf16>, vector<256x128xbf16>, vector<8x128xf32> -> vector<8x128xf32>
    %c0_9 = arith.constant 0 : index
    %c0_10 = arith.constant 0 : index
    %12 = vector.load %arg5[%c0_9, %c0_10] : memref<1x128xf32, #tpu.memory_space<vmem>>, vector<1x128xf32>
    %13 = vector.broadcast %12 : vector<1x128xf32> to vector<8x128xf32>
    %14 = arith.addf %11, %13 : vector<8x128xf32>
    %c0_11 = arith.constant 0 : index
    %c0_12 = arith.constant 0 : index
    %15 = vector.load %arg6[%c0_11, %c0_12] : memref<8x128xf32, #tpu.memory_space<vmem>>, vector<8x128xf32>
    tpu.vector_store %arg6[%c0_11, %c0_12], %14 {strides = array<i32>} : memref<8x128xf32, #tpu.memory_space<vmem>>, vector<8x128xf32>,
    return
  }
  func.func @transform_0(%arg0: i32) -> (i32, i32) {
    %c0_i32 = arith.constant 0 : i32
    %c0_i32_0 = arith.constant 0 : i32
    return %arg0, %c0_i32 : i32, i32
  }
  func.func @transform_1(%arg0: i32) -> (i32, i32) {
    %c0_i32 = arith.constant 0 : i32
    %c0_i32_0 = arith.constant 0 : i32
    %c0_i32_1 = arith.constant 0 : i32
    return %c0_i32, %c0_i32_0 : i32, i32
  }
  func.func @transform_2(%arg0: i32) -> (i32, i32) {
    %c0_i32 = arith.constant 0 : i32
    %c0_i32_0 = arith.constant 0 : i32
    %c0_i32_1 = arith.constant 0 : i32
    return %c0_i32, %c0_i32_0 : i32, i32
  }
  func.func @transform_3(%arg0: i32) -> (i32, i32) {
    %c0_i32 = arith.constant 0 : i32
    %c0_i32_0 = arith.constant 0 : i32
    %c0_i32_1 = arith.constant 0 : i32
    return %c0_i32, %c0_i32_0 : i32, i32
  }
  func.func @transform_4(%arg0: i32) -> (i32, i32) {
    %c0_i32 = arith.constant 0 : i32
    %c0_i32_0 = arith.constant 0 : i32
    %c0_i32_1 = arith.constant 0 : i32
    return %c0_i32, %c0_i32_0 : i32, i32
  }
  func.func @transform_5(%arg0: i32) -> (i32, i32) {
    %c0_i32 = arith.constant 0 : i32
    %c0_i32_0 = arith.constant 0 : i32
    return %arg0, %c0_i32 : i32, i32
  }
}

</mosaic_0001>

<bundles_post_ra>
// kernel: tpu_custom_call.1
= control target key start
LH: loop header
LB: loop body
LE: loop exit
PB: predicated region body
PF: predicated region fallthrough
CT: control target
= control target key end

     0   :  { %10 = vsyncpa [#allocation3], 0  ;;  %s835_s0 = inlined_call_operand.hbm [shape: f32[8,256], index: 0, kind: input, shape index: {}]   ;;  %s836_s1 = inlined_call_operand.hbm [shape: bf16[256,256], index: 1, kind: input, shape index: {}]   ;;  %s837_s2 = inlined_call_operand.vmem [shape: f32[1,256], index: 2, kind: input, shape index: {}]   ;;  %s838_s3 = inlined_call_operand.hbm [shape: bf16[256,128], index: 3, kind: input, shape index: {}]   ;;  %s839_s4 = inlined_call_operand.vmem [shape: f32[1,128], index: 4, kind: input, shape index: {}]   ;;  %s840_s5 = inlined_call_operand.hbm [shape: f32[8,128], index: 5, kind: output, shape index: {}]  }
   0x1   :  { %11 = vsyncpa [#allocation6], 0 }
   0x2   :  { %12 = vsyncpa [#allocation4], 0  ;;  %s743_s18 = smov [#allocation5]   ;;  %s649_s22 = scalar_lea.hbm %s836_s1, 4096 }
   0x3   :  { %s28_s19 = sshll.u32 %s743_s18, 4  ;;  %p650_p0 = scmp.ne.s32.totalorder %s836_s1, %s649_s22  ;;  %s29_s19 = int_to_ptr.vmem [resolvable:$true] %s28_s19 }
   0x4   :  { %p653_p1 = scmp.lt.u32.totalorder %s649_s22, %s836_s1 }
   0x6   :  { %p655_p2 = pnand %p653_p1, %p650_p0 }
   0x8   :  { %658 = shalt.err (!%p655_p2)
}
   0x9   :  { %s659_s27 = scalar_lea.vmem %s29_s19, 4096  ;;  %p664_p4 = scmp.lt.s32.totalorder %s29_s19, %s29_s19 }
   0xa   :  { %p660_p3 = scmp.ne.s32.totalorder %s29_s19, %s659_s27  ;;  %p665_p5 = scmp.lt.s32.totalorder %s659_s27, %s659_s27 }
   0xc   :  { %p666_p6 = por %p665_p5, %p664_p4 }
   0xe   :  { %p667_p7 = pnand %p666_p6, %p660_p3 }
  0x10   :  { %670 = shalt.err (!%p667_p7)
}
  0x11   :  { %s744_s28 = smov 128   ;;  %s745_s29 = smov 8  }
  0x12   :  { %34 = dma.hbm_to_vmem [thread:$0]  %s836_s1, 4096, %s29_s19, [#allocation6], %s744_s28, %s744_s28, %s745_s29  }
  0x13   :  { %s746_s7 = smov [#allocation2]   ;;  %s747_s9 = smov [#allocation7]  }
  0x14   :  { %s19_s8 = sshll.u32 %s746_s7, 4  ;;  %s42_s10 = sshll.u32 %s747_s9, 4  ;;  %s20_s8 = int_to_ptr.vmem [resolvable:$true] %s19_s8  ;;  %s43_s10 = int_to_ptr.vmem [resolvable:$true] %s42_s10 }
  0x15   :  { %s671_s13 = scalar_lea.hbm %s835_s0, 256 }
  0x16   :  { %p672_p8 = scmp.ne.s32.totalorder %s835_s0, %s671_s13  ;;  %p675_p9 = scmp.lt.u32.totalorder %s671_s13, %s835_s0 }
  0x18   :  { %p677_p10 = pnand %p675_p9, %p672_p8 }
  0x1a   :  { %680 = shalt.err (!%p677_p10)
}
  0x1b   :  { %s681_s1 = scalar_lea.vmem %s20_s8, 256  ;;  %p686_p12 = scmp.lt.s32.totalorder %s20_s8, %s20_s8 }
  0x1c   :  { %p682_p11 = scmp.ne.s32.totalorder %s20_s8, %s681_s1  ;;  %p687_p13 = scmp.lt.s32.totalorder %s681_s1, %s681_s1 }
  0x1e   :  { %p688_p0 = por %p687_p13, %p686_p12 }
  0x20   :  { %p689_p1 = pnand %p688_p0, %p682_p11 }
  0x22   :  { %692 = shalt.err (!%p689_p1)
}
  0x23   :  { %22 = dma.hbm_to_vmem [thread:$0]  %s835_s0, 256, %s20_s8, [#allocation3]  }
  0x24   :  { %s693_s22 = scalar_lea.hbm %s838_s3, 2048 }
  0x25   :  { %p694_p2 = scmp.ne.s32.totalorder %s838_s3, %s693_s22  ;;  %p697_p3 = scmp.lt.u32.totalorder %s693_s22, %s838_s3 }
  0x27   :  { %p699_p4 = pnand %p697_p3, %p694_p2 }
  0x29   :  { %702 = shalt.err (!%p699_p4)
}
  0x2a   :  { %s703_s27 = scalar_lea.vmem %s43_s10, 2048  ;;  %p708_p6 = scmp.lt.s32.totalorder %s43_s10, %s43_s10 }
  0x2b   :  { %p704_p5 = scmp.ne.s32.totalorder %s43_s10, %s703_s27  ;;  %p709_p7 = scmp.lt.s32.totalorder %s703_s27, %s703_s27 }
  0x2d   :  { %p710_p8 = por %p709_p7, %p708_p6 }
  0x2f   :  { %p711_p9 = pnand %p710_p8, %p704_p5 }
  0x31   :  { %714 = shalt.err (!%p711_p9)
}
  0x32   :  { %s748_s0 = smov 64   ;;  %s749_s28 = smov 4  }
  0x33   :  { %48 = dma.hbm_to_vmem [thread:$0]  %s838_s3, 2048, %s43_s10, [#allocation6], %s748_s0, %s748_s0, %s749_s28  }
  0x34   :  { %737 = dma.done.wait [#allocation3], 256  }
  0x35   :  { %738 = vsyncadd [#allocation3], 4294967040 }
  0x36   :  { %739 = dma.done.wait [#allocation6], 6144  }
  0x37   :  { %740 = vsyncadd [#allocation6], 4294961152  ;;  %v585_v0 = vld [vmem:[#allocation5 + $0x4] ss:$8 sps:$4 sm:$0xff]   ;;  %v587_v1 = vld [vmem:[#allocation5] ss:$8 sps:$4 sm:$0xff]   ;;  %v99_v52 = vlaneseq }
  0x38   :  { %269 = vmatprep.subr.bf16.mxu0 %v585_v0  ;;  %v588_v2 = vld [vmem:[#allocation5 + $0x14] ss:$8 sps:$4 sm:$0xff]   ;;  %v590_v3 = vld [vmem:[#allocation5 + $0x10] ss:$8 sps:$4 sm:$0xff]   ;;  %v591_v4 = vld [vmem:[#allocation5 + $0x24] ss:$8 sps:$4 sm:$0xff]  }
  0x39   :  { %270 = vmatpush1.bf16.msra.mxu0 %v587_v1  ;;  %v593_v5 = vld [vmem:[#allocation5 + $0x20] ss:$8 sps:$4 sm:$0xff]   ;;  %v594_v6 = vld [vmem:[#allocation5 + $0x34] ss:$8 sps:$4 sm:$0xff]   ;;  %v596_v7 = vld [vmem:[#allocation5 + $0x30] ss:$8 sps:$4 sm:$0xff]  }
  0x3a   :  { %271 = vmatprep.subr.bf16.mxu0 %v588_v2  ;;  %v597_v8 = vld [vmem:[#allocation5 + $0x44] ss:$8 sps:$4 sm:$0xff]   ;;  %v599_v9 = vld [vmem:[#allocation5 + $0x40] ss:$8 sps:$4 sm:$0xff]   ;;  %v600_v10 = vld [vmem:[#allocation5 + $0x54] ss:$8 sps:$4 sm:$0xff]  }
  0x3b   :  { %v602_v11 = vld [vmem:[#allocation5 + $0x50] ss:$8 sps:$4 sm:$0xff]   ;;  %v603_v12 = vld [vmem:[#allocation5 + $0x64] ss:$8 sps:$4 sm:$0xff]   ;;  %v605_v13 = vld [vmem:[#allocation5 + $0x60] ss:$8 sps:$4 sm:$0xff]  }
  0x3c   :  { %v62_v14 = vld [vmem:[#allocation2 + $0x8] sm:$0xff]  ;;  %v633_v17 = vld [vmem:[#allocation7 + $0x40] sm:$0xff]   ;;  %v635_v19 = vld [vmem:[#allocation7 + $0x48] sm:$0xff]   ;;  %v100_v53 = vshrl.u32 %v99_v52, 7 }
  0x3d   :  { %272 = vmatpush1.bf16.msra.mxu0 %v590_v3  ;;  %v606_v15 = vld [vmem:[#allocation5 + $0x74] ss:$8 sps:$4 sm:$0xff]   ;;  %v64_v16 = vpack.c.bf16 %v62_v14, %v62_v14  ;;  %v634_v18 = vld [vmem:[#allocation7] sm:$0xff]   ;;  %v608_v20 = vld [vmem:[#allocation5 + $0x70] ss:$8 sps:$4 sm:$0xff]   ;;  %555 = vmatprep.subr.bf16.mxu1 %v633_v17 }
  0x3e   :  { %273 = vmatprep.subr.bf16.mxu0 %v591_v4  ;;  %556 = vmatpush3.bf16.msra.mxu1 %v634_v18  ;;  %v636_v21 = vld [vmem:[#allocation7 + $0x8] sm:$0xff]   ;;  %v637_v22 = vld [vmem:[#allocation7 + $0x50] sm:$0xff]   ;;  %v639_v26 = vld [vmem:[#allocation7 + $0x58] sm:$0xff]   ;;  %v101_v54 = vsub.s32 0, %v100_v53  ;;  %v105_v56 = vsub.s32 1, %v100_v53 }
  0x3f   :  { %301 = vmatprep.mubr.bf16.mxu0 %v64_v16  ;;  %557 = vmatprep.subr.bf16.mxu1 %v635_v19  ;;  %v609_v23 = vld [vmem:[#allocation5 + $0x84] ss:$8 sps:$4 sm:$0xff]   ;;  %v611_v24 = vld [vmem:[#allocation5 + $0x80] ss:$8 sps:$4 sm:$0xff]   ;;  %v638_v25 = vld [vmem:[#allocation7 + $0x10] sm:$0xff]  }
  0x40   :  { %v612_v27 = vld [vmem:[#allocation5 + $0x94] ss:$8 sps:$4 sm:$0xff]   ;;  %v614_v28 = vld [vmem:[#allocation5 + $0x90] ss:$8 sps:$4 sm:$0xff]   ;;  %v615_v30 = vld [vmem:[#allocation5 + $0xa4] ss:$8 sps:$4 sm:$0xff]  }
  0x41   :  { %274 = vmatpush1.bf16.msra.mxu0 %v593_v5  ;;  %v640_v29 = vld [vmem:[#allocation7 + $0x18] sm:$0xff]   ;;  %v641_v31 = vld [vmem:[#allocation7 + $0x60] sm:$0xff]   ;;  %v643_v34 = vld [vmem:[#allocation7 + $0x68] sm:$0xff]  }
  0x42   :  { %275 = vmatprep.subr.bf16.mxu0 %v594_v6  ;;  %558 = vmatpush3.bf16.msra.mxu1 %v636_v21  ;;  %v642_v32 = vld [vmem:[#allocation7 + $0x20] sm:$0xff]   ;;  %v618_v35 = vld [vmem:[#allocation5 + $0xb4] ss:$8 sps:$4 sm:$0xff]   ;;  %v644_v36 = vld [vmem:[#allocation7 + $0x28] sm:$0xff]  }
  0x43   :  { %559 = vmatprep.subr.bf16.mxu1 %v637_v22  ;;  %v617_v33 = vld [vmem:[#allocation5 + $0xa0] ss:$8 sps:$4 sm:$0xff]   ;;  %v620_v37 = vld [vmem:[#allocation5 + $0xb0] ss:$8 sps:$4 sm:$0xff]   ;;  %v621_v38 = vld [vmem:[#allocation5 + $0xc4] ss:$8 sps:$4 sm:$0xff]  }
  0x44   :  { %v623_v39 = vld [vmem:[#allocation5 + $0xc0] ss:$8 sps:$4 sm:$0xff]   ;;  %v624_v40 = vld [vmem:[#allocation5 + $0xd4] ss:$8 sps:$4 sm:$0xff]   ;;  %v626_v41 = vld [vmem:[#allocation5 + $0xd0] ss:$8 sps:$4 sm:$0xff]  }
  0x45   :  { %276 = vmatpush1.bf16.msra.mxu0 %v596_v7  ;;  %v627_v42 = vld [vmem:[#allocation5 + $0xe4] ss:$8 sps:$4 sm:$0xff]   ;;  %v629_v43 = vld [vmem:[#allocation5 + $0xe0] ss:$8 sps:$4 sm:$0xff]   ;;  %v630_v44 = vld [vmem:[#allocation5 + $0xf4] ss:$8 sps:$4 sm:$0xff]  }
  0x46   :  { %277 = vmatprep.subr.bf16.mxu0 %v597_v8  ;;  %560 = vmatpush3.bf16.msra.mxu1 %v638_v25  ;;  %v632_v45 = vld [vmem:[#allocation5 + $0xf0] ss:$8 sps:$4 sm:$0xff]  }
  0x47   :  { %561 = vmatprep.subr.bf16.mxu1 %v639_v26  ;;  %v61_v46 = vld [vmem:[#allocation2] sm:$0xff]  ;;  %v647_v50 = vld [vmem:[#allocation7 + $0x78] sm:$0xff]  }
  0x48   :  { %v63_v47 = vpack.c.bf16 %v61_v46, %v61_v46  ;;  %v645_v48 = vld [vmem:[#allocation7 + $0x70] sm:$0xff]   ;;  %v648_v51 = vld [vmem:[#allocation7 + $0x38] sm:$0xff]  }
  0x49   :  { %278 = vmatpush1.bf16.msra.mxu0 %v599_v9  ;;  %v646_v49 = vld [vmem:[#allocation7 + $0x30] sm:$0xff]  }
  0x4a   :  { %279 = vmatprep.subr.bf16.mxu0 %v600_v10  ;;  %562 = vmatpush3.bf16.msra.mxu1 %v640_v29  ;;  %v97_v55 = vld [vmem:[%s837_s2] sm:$0x3]  ;;  %s750_s2 = smov [#allocation8]  }
  0x4b   :  { %563 = vmatprep.subr.bf16.mxu1 %v641_v31  ;;  %v102_v57 = vrot.slane %v97_v55, %v101_v54  ;;  %v106_v58 = vrot.slane %v97_v55, %v105_v56  ;;  %v538_v6 = vld [vmem:[%s839_s4] ss:$0 sm:$0xff]  ;;  %s496_s9 = sshll.u32 %s750_s2, 4  ;;  %s497_s9 = int_to_ptr.vmem [resolvable:$true] %s496_s9 }
  0x4c   :  { %s715_s10 = scalar_lea.vmem %s497_s9, 128  ;;  %p720_p11 = scmp.lt.s32.totalorder %s497_s9, %s497_s9 }
  0x4d   :  { %280 = vmatpush1.bf16.msra.mxu0 %v602_v11  ;;  %p716_p10 = scmp.ne.s32.totalorder %s497_s9, %s715_s10  ;;  %p721_p12 = scmp.lt.s32.totalorder %s715_s10, %s715_s10 }
  0x4e   :  { %281 = vmatprep.subr.bf16.mxu0 %v603_v12  ;;  %564 = vmatpush3.bf16.msra.mxu1 %v642_v32 }
  0x4f   :  { %565 = vmatprep.subr.bf16.mxu1 %v643_v34  ;;  %p722_p13 = por %p721_p12, %p720_p11 }
  0x51   :  { %282 = vmatpush1.bf16.msra.mxu0 %v605_v13  ;;  %p723_p0 = pnand %p722_p13, %p716_p10 }
  0x52   :  { %283 = vmatprep.subr.bf16.mxu0 %v606_v15  ;;  %566 = vmatpush3.bf16.msra.mxu1 %v644_v36 }
  0x53   :  { %567 = vmatprep.subr.bf16.mxu1 %v645_v48 }
  0x55   :  { %284 = vmatpush1.bf16.msra.mxu0 %v608_v20 }
  0x56   :  { %285 = vmatprep.subr.bf16.mxu0 %v609_v23  ;;  %568 = vmatpush3.bf16.msra.mxu1 %v646_v49 }
  0x57   :  { %569 = vmatprep.subr.bf16.mxu1 %v647_v50 }
  0x59   :  { %286 = vmatpush1.bf16.msra.mxu0 %v611_v24 }
  0x5a   :  { %287 = vmatprep.subr.bf16.mxu0 %v612_v27  ;;  %570 = vmatpush3.bf16.msra.mxu1 %v648_v51 }
  0x5d   :  { %288 = vmatpush1.bf16.msra.mxu0 %v614_v28 }
  0x5e   :  { %289 = vmatprep.subr.bf16.mxu0 %v615_v30 }
  0x61   :  { %290 = vmatpush1.bf16.msra.mxu0 %v617_v33 }
  0x62   :  { %291 = vmatprep.subr.bf16.mxu0 %v618_v35 }
  0x65   :  { %292 = vmatpush1.bf16.msra.mxu0 %v620_v37 }
  0x66   :  { %293 = vmatprep.subr.bf16.mxu0 %v621_v38 }
  0x69   :  { %294 = vmatpush1.bf16.msra.mxu0 %v623_v39 }
  0x6a   :  { %295 = vmatprep.subr.bf16.mxu0 %v624_v40 }
  0x6d   :  { %296 = vmatpush1.bf16.msra.mxu0 %v626_v41 }
  0x6e   :  { %297 = vmatprep.subr.bf16.mxu0 %v627_v42 }
  0x71   :  { %298 = vmatpush1.bf16.msra.mxu0 %v629_v43 }
  0x72   :  { %299 = vmatprep.subr.bf16.mxu0 %v630_v44 }
  0x75   :  { %300 = vmatpush1.bf16.msra.mxu0 %v632_v45 }
  0x78   :  { %302 = vmatmul.mubr.bf16.vlgmr.msra.gmra.mrb[0].mxu0 %v63_v47 }
 0x14b   :  { %v303_v59 = vpop.f32.mrb[0].mxu0 }
 0x14c   :  { %v304_v60 = vadd.f32 %v303_v59, %v102_v57  ;;  %v305_v61 = vpop.f32.mrb[1].mxu0 }
 0x14d   :  { %v306_v62 = vadd.f32 %v305_v61, %v106_v58  ;;  %v307_v63 = vpop.f32.mrb[2].mxu0 }
 0x14e   :  { %v310_v0 = vmax.f32 %v304_v60, 0.0  ;;  %v308_v1 = vpop.f32.mrb[3].mxu0 }
 0x14f   :  { %v311_v2 = vmax.f32 %v306_v62, 0.0 }
 0x150   :  { %v312_v4 = vpack.c.bf16 %v310_v0, %v310_v0 }
 0x151   :  { %v313_v3 = vpack.c.bf16 %v311_v2, %v311_v2 }
 0x153   :  { %481 = vmatprep.mubr.bf16.mxu1 %v313_v3 }
 0x154   :  { %482 = vmatmul.mubr.bf16.vlgmr.msra.gmra.mrb[0].mxu1 %v312_v4 }
 0x227   :  { %v571_v5 = vpop.f32.mrb[0].mxu1 }
 0x228   :  { %v572_v7 = vpop.f32.mrb[1].mxu1 }
 0x229   :  { %v573_v8 = vadd.f32 %v572_v7, %v571_v5  ;;  %v574_v9 = vpop.f32.mrb[2].mxu1 }
 0x22a   :  { %v575_v10 = vpop.f32.mrb[3].mxu1 }
 0x22b   :  { %v484_v11 = vadd.f32 %v573_v8, %v538_v6 }
 0x22d   :  { %489 = vst [vmem:[#allocation8] sm:$0xff] %v484_v11 }
 0x22e   :  { %726 = shalt.err (!%p723_p0)
}
 0x22f   :  { %s727_s4 = scalar_lea.hbm %s840_s5, 128 }
 0x230   :  { %p728_p1 = scmp.ne.s32.totalorder %s840_s5, %s727_s4  ;;  %p731_p2 = scmp.lt.u32.totalorder %s727_s4, %s840_s5 }
 0x232   :  { %p733_p3 = pnand %p731_p2, %p728_p1 }
 0x234   :  { %736 = shalt.err (!%p733_p3)
}
 0x235   :  { %499 = dma.vmem_to_hbm [thread:$0]  %s497_s9, 128, %s840_s5, [#allocation4]  }
 0x236   :  { %741 = dma.done.wait [#allocation4], 128  }
 0x237   :  { %742 = vsyncadd [#allocation4], 4294967168 }
 0x238   :  { %503 = vsyncpa [#allocation3], 1 }
 0x239   :  { %504 = vsyncpa [#allocation6], 1 }
 0x23a   :  { %505 = vsyncpa [#allocation4], 1 }

</bundles_post_ra>
